<compile_context>
chip_gen: v5e
topology: v5e:2x2
jax: 0.10.0
libtpu: 0.0.40
codegen_flags: <defaults>
</compile_context>

<pallas_src>
import jax
import jax.numpy as jnp
from jax.experimental import pallas as pl
from jax.experimental.pallas import tpu as pltpu

_LANE = 128     # vreg lane width
_SUBLANE = 8    # vreg sublane count (f32)


def _round_up(x, m):
    return -(-x // m) * m


def _vmem_capacity_bytes():
    """Physical per-core VMEM; conservative fallback if the query fails."""
    try:
        cap = getattr(pltpu.get_tpu_info(), "vmem_capacity_bytes", None)
        if cap:
            return int(cap)
    except Exception:
        pass
    return 64 << 20  # v7x-sized fallback (safe on every generation)


def _fcf_kernel(u_ref, v_ref, o_ref):
    # u_ref: (U, F) resident user factor; v_ref: (F, tn) streamed item tile;
    # o_ref: (U, tn) rating-prediction tile.  f32 accumulation on the MXU.
    o_ref[...] = jnp.dot(
        u_ref[...], v_ref[...], preferred_element_type=jnp.float32
    ).astype(o_ref.dtype)


def _plan_tiles(F, M, U, item_itemsize, vmem_cap, tn=None):
    """Pick (tn, grid_len) with grid_len = ceil(M / tn).

    The tile is sized purely by bytes: double-buffered (F, tn) item tile plus
    double-buffered (U, tn) output tile must fit a VMEM working budget.  No
    lane hard-cap — for a mem-bound stream only bytes-per-step matter.
    """
    cdiv = lambda a, b: -(-a // b)
    m128 = _round_up(M, _LANE)

    if tn is not None:
        assert tn % _LANE == 0 and tn > 0, "tn must be a positive multiple of 128"
        tn = min(tn, m128)
        return tn, cdiv(M, tn)

    fp = _round_up(max(F, 1), _SUBLANE)
    up = _round_up(max(U, 1), _SUBLANE)
    # VMEM bytes per output column (sublane-padded, both arrays double-buffered).
    per_col = 2 * fp * item_itemsize + 2 * up * 4
    working_budget = min(48 << 20, vmem_cap // 2)
    tn_cap = max(_LANE, (working_budget // per_col) // _LANE * _LANE)

    if tn_cap >= m128:
        # Whole problem fits one tile.  For non-trivial sizes still split in
        # two so v7x can shard the parallel axis across both TensorCores and
        # DMA overlaps compute; tiny problems stay single-block (no per-step
        # overhead, full-dim block is always layout-legal).
        item_bytes = F * M * item_itemsize
        if item_bytes > (2 << 20) and m128 >= 2 * _LANE:
            tn_half = cdiv(m128 // _LANE, 2) * _LANE
            return tn_half, cdiv(M, tn_half)
        return M, 1
    return tn_cap, cdiv(M, tn_cap)


def fcf_forward(user_factor, item_factor, *, tn=None):
    """Pallas implementation of LocalFCFModel.forward.

    user_factor : (U, F)  float32 (U == 1 matches the PyTorch module)
    item_factor : (F, M)  float32 or bfloat16, arbitrary M
    returns     : (U, M)  float32
    """
    U, F = user_factor.shape
    F2, M = item_factor.shape
    assert F == F2, "feature dims must match"

    isize = jnp.dtype(item_factor.dtype).itemsize
    vmem_cap = _vmem_capacity_bytes()
    tile_n, grid_len = _plan_tiles(F, M, U, isize, vmem_cap, tn=tn)

    # Scoped-VMEM limit sized to the chosen tiles (+ compiler headroom), capped
    # at 80% of physical VMEM so the big-tile path stays robust on v7x (64 MiB).
    fp = _round_up(F, _SUBLANE)
    up = _round_up(U, _SUBLANE)
    needed = (2 * fp * tile_n * isize             # double-buffered item tile
              + 2 * up * tile_n * 4               # double-buffered output tile
              + 2 * up * _round_up(F, _LANE) * 4) # user-factor buffers
    vmem_limit = int(min(max(needed + (8 << 20), 32 << 20),
                         int(0.8 * vmem_cap)))

    cost = pl.CostEstimate(
        flops=2 * U * F * M,
        transcendentals=0,
        bytes_accessed=F * M * isize
        + U * F * jnp.dtype(user_factor.dtype).itemsize
        + U * M * 4,
    )

    return pl.pallas_call(
        _fcf_kernel,
        out_shape=jax.ShapeDtypeStruct((U, M), jnp.float32),
        grid_spec=pltpu.PrefetchScalarGridSpec(
            num_scalar_prefetch=0,
            grid=(grid_len,),
            in_specs=[
                # full user factor, same block every step (stays resident)
                pl.BlockSpec((U, F), lambda j: (0, 0)),
                # streamed column tile of the shared item factor
                pl.BlockSpec((F, tile_n), lambda j: (0, j)),
            ],
            out_specs=pl.BlockSpec((U, tile_n), lambda j: (0, j)),
        ),
        compiler_params=pltpu.CompilerParams(
            dimension_semantics=("parallel",),
            vmem_limit_bytes=vmem_limit,
        ),
        cost_estimate=cost,
    )(user_factor, item_factor)


if __name__ == "__main__":
    key = jax.random.PRNGKey(0)
    k_user, k_item, k_item2, k_user3 = jax.random.split(key, 4)

    features = 32      # latent factor dimension
    n_movies = 256     # number of items

    # nn.init.normal_(torch.empty(1, features), std=0.35)
    user_factor = 0.35 * jax.random.normal(k_user, (1, features), dtype=jnp.float32)
    # server-shared item factor [features, n_movies]
    item_factor = jax.random.normal(k_item, (features, n_movies), dtype=jnp.float32)

    # References computed at highest precision; tolerance covers MXU bf16-pass
    # rounding of the f32 matmul (contraction dim is only 32).
    tol = dict(atol=2e-2, rtol=2e-2)
    hi = jax.lax.Precision.HIGHEST

    # 1) Auto-planned path (tiny problem -> single full-dim block, grid=1).
    out = jax.block_until_ready(fcf_forward(user_factor, item_factor))
    ref = jnp.dot(user_factor, item_factor, precision=hi)
    assert out.shape == (1, n_movies)
    assert jnp.allclose(out, ref, **tol)

    # 2) Forced small tile: multi-step grid + ragged last tile, no HBM pad.
    n_movies2 = 300
    item_factor2 = jax.random.normal(k_item2, (features, n_movies2), dtype=jnp.float32)
    out2 = jax.block_until_ready(fcf_forward(user_factor, item_factor2, tn=128))
    ref2 = jnp.dot(user_factor, item_factor2, precision=hi)
    assert out2.shape == (1, n_movies2)
    assert jnp.allclose(out2, ref2, **tol)

    # 3) Multi-user batching path (U=3, auto tile, ragged single block).
    user_factor3 = 0.35 * jax.random.normal(k_user3, (3, features), dtype=jnp.float32)
    out3 = jax.block_until_ready(fcf_forward(user_factor3, item_factor2))
    ref3 = jnp.dot(user_factor3, item_factor2, precision=hi)
    assert out3.shape == (3, n_movies2)
    assert jnp.allclose(out3, ref3, **tol)

    print("KERNEL_OK")
</pallas_src>

<mosaic_0001>
module attributes {stable_mosaic.version = 11 : i64} {
  func.func @_fcf_kernel(%arg0: i32, %arg1: memref<1x32xf32, #tpu.memory_space<vmem>>, %arg2: memref<32x256xf32, #tpu.memory_space<vmem>>, %arg3: memref<1x256xf32, #tpu.memory_space<vmem>>) attributes {dimension_semantics = [#tpu.dimension_semantics<parallel>], iteration_bounds = array<i64: 1>, scalar_prefetch = 0 : i64, scratch_operands = 0 : i64, tpu.core_type = #tpu.core_type<tc>, window_params = [{pipeline_mode = #tpu.pipeline_mode<synchronous>, transform_indices = @transform_0, window_bounds = array<i64: 1, 32>}, {transform_indices = @transform_1, window_bounds = array<i64: 32, 256>}, {transform_indices = @transform_2, window_bounds = array<i64: 1, 256>}]} {
    %c0 = arith.constant 0 : index
    %c0_0 = arith.constant 0 : index
    %0 = vector.load %arg1[%c0, %c0_0] : memref<1x32xf32, #tpu.memory_space<vmem>>, vector<1x32xf32>
    %c0_1 = arith.constant 0 : index
    %c0_2 = arith.constant 0 : index
    %1 = vector.load %arg2[%c0_1, %c0_2] : memref<32x256xf32, #tpu.memory_space<vmem>>, vector<32x256xf32>
    %cst = arith.constant dense<0.000000e+00> : vector<1x256xf32>
    %2 = tpu.matmul %0, %1, %cst {dimension_numbers = #tpu.dot_dimension_numbers<[1], [0], [0], [1], [0, 0, 1, 1], [], []>} : vector<1x32xf32>, vector<32x256xf32>, vector<1x256xf32> -> vector<1x256xf32>
    %c0_3 = arith.constant 0 : index
    %c0_4 = arith.constant 0 : index
    %3 = vector.load %arg3[%c0_3, %c0_4] : memref<1x256xf32, #tpu.memory_space<vmem>>, vector<1x256xf32>
    tpu.vector_store %arg3[%c0_3, %c0_4], %2 {strides = array<i32>} : memref<1x256xf32, #tpu.memory_space<vmem>>, vector<1x256xf32>,
    return
  }
  func.func @transform_0(%arg0: i32) -> (i32, i32) {
    %c0_i32 = arith.constant 0 : i32
    %c0_i32_0 = arith.constant 0 : i32
    %c0_i32_1 = arith.constant 0 : i32
    return %c0_i32, %c0_i32_0 : i32, i32
  }
  func.func @transform_1(%arg0: i32) -> (i32, i32) {
    %c0_i32 = arith.constant 0 : i32
    %c0_i32_0 = arith.constant 0 : i32
    return %c0_i32, %arg0 : i32, i32
  }
  func.func @transform_2(%arg0: i32) -> (i32, i32) {
    %c0_i32 = arith.constant 0 : i32
    %c0_i32_0 = arith.constant 0 : i32
    return %c0_i32, %arg0 : i32, i32
  }
}

</mosaic_0001>

<bundles_post_ra>
// kernel: tpu_custom_call.1
= control target key start
LH: loop header
LB: loop body
LE: loop exit
PB: predicated region body
PF: predicated region fallthrough
CT: control target
= control target key end

     0   :  { %7 = vsyncpa [#allocation3], 0  ;;  %s238_s0 = inlined_call_operand.hbm [shape: f32[1,32], index: 0, kind: input, shape index: {}]   ;;  %s239_s1 = inlined_call_operand.hbm [shape: f32[32,256], index: 1, kind: input, shape index: {}]   ;;  %s240_s2 = inlined_call_operand.hbm [shape: f32[1,256], index: 2, kind: output, shape index: {}]  }
   0x1   :  { %8 = vsyncpa [#allocation6], 0 }
   0x2   :  { %9 = vsyncpa [#allocation4], 0  ;;  %s15_s11 = sshll.u32 %s238_s0, 4  ;;  %s209_s12 = smov [#allocation2]   ;;  %s16_s11 = int_to_ptr.hbm [resolvable:$true] %s15_s11 }
   0x3   :  { %s17_s13 = sshll.u32 %s209_s12, 4  ;;  %s25_s16 = sshll.u32 %s239_s1, 4  ;;  %s18_s13 = int_to_ptr.vmem [resolvable:$true] %s17_s13  ;;  %s26_s16 = int_to_ptr.hbm [resolvable:$true] %s25_s16 }
   0x4   :  { %20 = dma.hbm_to_vmem [thread:$0]  %s16_s11, 16, %s18_s13, [#allocation3]  }
   0x5   :  { %s210_s17 = smov [#allocation5]   ;;  %s211_s19 = smov 256  }
   0x6   :  { %s27_s18 = sshll.u32 %s210_s17, 4  ;;  %s212_s20 = smov 16   ;;  %s28_s18 = int_to_ptr.vmem [resolvable:$true] %s27_s18 }
   0x7   :  { %33 = dma.hbm_to_vmem [thread:$0]  %s26_s16, 1024, %s28_s18, [#allocation6], %s211_s19, %s211_s19, %s212_s20  }
   0x8   :  { %203 = dma.done.wait [#allocation3], 16  }
   0x9   :  { %204 = vsyncadd [#allocation3], 4294967280 }
   0xa   :  { %205 = dma.done.wait [#allocation6], 1024  }
   0xb   :  { %206 = vsyncadd [#allocation6], 4294966272  ;;  %v50_v0 = vld [vmem:[#allocation5 + $0x38] sm:$0xff]  ;;  %v49_v1 = vld [vmem:[#allocation5 + $0x30] sm:$0xff]  ;;  %vm51_vm0 = vcmask 261120   ;;  %v101_v9 = vlaneseq  ;;  %s213_s0 = smov [#allocation7]  }
   0xc   :  { %v48_v2 = vld [vmem:[#allocation5 + $0x28] sm:$0xff]  ;;  %87 = vmatpush.msra.mxu1 %v50_v0  ;;  %67 = vmatpush.msra.mxu0 %v49_v1  ;;  %v47_v3 = vld [vmem:[#allocation5 + $0x20] sm:$0xff]  ;;  %v46_v4 = vld [vmem:[#allocation5 + $0x18] sm:$0xff]  ;;  %s111_s1 = sshll.u32 %s213_s0, 4  ;;  %s113_s23 = sshll.u32 %s240_s2, 4  ;;  %vm98_vm1 = vcmask 1040384   ;;  %s112_s1 = int_to_ptr.vmem [resolvable:$true] %s111_s1  ;;  %s114_s23 = int_to_ptr.hbm [resolvable:$true] %s113_s23 }
   0xd   :  { %v45_v5 = vld [vmem:[#allocation5 + $0x10] sm:$0xff]  ;;  %v44_v6 = vld [vmem:[#allocation5 + $0x8] sm:$0xff]  ;;  %v43_v7 = vld [vmem:[#allocation5] sm:$0xff]  ;;  %vm103_vm2 = vcmp.lt.s32.totalorder %v101_v9, 256 }
   0xe   :  { %88 = vmatpush.msra.mxu1 %v48_v2  ;;  %68 = vmatpush.msra.mxu0 %v47_v3  ;;  %v42_v8 = vld [vmem:[#allocation2] sm:$0x1] }
  0x10   :  { %89 = vmatpush.msra.mxu1 %v46_v4  ;;  %69 = vmatpush.msra.mxu0 %v45_v5 }
  0x12   :  { %90 = vmatpush.msra.mxu1 %v44_v6  ;;  %70 = vmatpush.msra.mxu0 %v43_v7 }
  0x13   :  { %125 = vmatmul.msk.f32.vlgmr.msra.gmra.mxu1 %vm51_vm0, %v42_v8  ;;  %124 = vmatmul.msk.f32.vlgmr.msra.gmra.mxu0 %vm51_vm0, %v42_v8 }
  0x90   :  { %v92_v10 = vpop.f32.mrf.mxu1  ;;  %v72_v11 = vpop.f32.mrf.mxu0 }
  0x91   :  { %v97_v12 = vrot.slane %v92_v10, 7 }
  0x93   :  { %v99_v13 = vsel %vm98_vm1, %v72_v11, %v97_v12 }
  0x94   :  { %105 = vst.msk [vmem:[#allocation7] sm:$0x3] %vm103_vm2, %v99_v13 }
  0x95   :  { %116 = dma.vmem_to_hbm [thread:$0]  %s112_s1, 32, %s114_s23, [#allocation4]  }
  0x96   :  { %207 = dma.done.wait [#allocation4], 32  }
  0x97   :  { %208 = vsyncadd [#allocation4], 4294967264 }
  0x98   :  { %121 = vsyncpa [#allocation3], 1 }
  0x99   :  { %122 = vsyncpa [#allocation6], 1 }
  0x9a   :  { %123 = vsyncpa [#allocation4], 1 }

</bundles_post_ra>
